<compile_context>
chip_gen: v6e
topology: v6e:2x2x1
jax: 0.10.0
libtpu: 0.0.40
codegen_flags: <defaults>
</compile_context>

<pallas_src>
import functools

import jax
import jax.numpy as jnp
from jax.experimental import pallas as pl
from jax.experimental.pallas import tpu as pltpu


def _decoder_kernel(const_ref, z_ref, out_ref, *, dims, offs):
    """Single grid step: whole (batch-folded) problem lives in VMEM.

    const_ref : (R, 128) packed constant slab
    z_ref     : (B*d, Z) batch-folded latent input
    out_ref   : (B*d, Z+O) merged output slab (mat_z | out)
    """
    BD, Z, H, O = dims
    o_A, o_C, o_W1, o_b1, o_W2, o_b2 = offs

    # Static slices of the packed slab (layout plumbing, constants DMA'd once).
    a_bd = const_ref[o_A:o_A + BD, 0:BD]     # (BD, BD) block-diag adjacency
    c_t = const_ref[o_C:o_C + BD, 0:Z]       # (BD, Z)  tiled Wa correction
    w1 = const_ref[o_W1:o_W1 + Z, 0:H]       # (Z, H)
    b1 = const_ref[o_b1:o_b1 + 1, 0:H]       # (1, H)
    w2 = const_ref[o_W2:o_W2 + H, 0:O]       # (H, O)
    b2 = const_ref[o_b2:o_b2 + 1, 0:O]       # (1, O)

    z = z_ref[...]                            # (BD, Z)

    # One MXU push per layer; batch folded into the M dimension everywhere.
    mat_z = jnp.dot(a_bd, z, preferred_element_type=jnp.float32) + c_t       # (BD, Z)
    h3 = jnp.maximum(
        jnp.dot(mat_z, w1, preferred_element_type=jnp.float32) + b1, 0.0)    # (BD, H)
    out = jnp.dot(h3, w2, preferred_element_type=jnp.float32) + b2           # (BD, O)

    out_ref[:, 0:Z] = mat_z.astype(out_ref.dtype)
    out_ref[:, Z:Z + O] = out.astype(out_ref.dtype)


def _pad8(r):
    return -(-r // 8) * 8


def mlp_decoder_forward(input_z, origin_A, adj_A_tilt, Wa, W1, b1, W2, b2):
    """Pallas-backed forward of MLPDecoder.

    input_z : (B, d, Z) float32
    origin_A: (d, d)    float32
    Wa      : (Z,)      float32
    W1      : (Z, H)    float32  (transposed vs. torch Linear.weight)
    b1      : (H,)
    W2      : (H, O)
    b2      : (O,)
    Returns (mat_z, out, adj_A_tilt).
    """
    B, d, Z = input_z.shape
    H = W1.shape[1]
    O = W2.shape[1]
    BD = B * d
    LANES = 128

    # --- plain-JAX glue: tiny d x d solve (I - A^T)^{-1} in float32 ---
    eye = jnp.eye(d, dtype=jnp.float32)
    adj_inv = jnp.linalg.solve(eye - origin_A.T, eye)                    # (d, d)

    # Wa correction: adj_inv @ (z + Wa) - Wa == adj_inv @ z + C.
    C = adj_inv.sum(axis=1, keepdims=True) * Wa[None, :] - Wa[None, :]   # (d, Z)
    C_tiled = jnp.tile(C, (B, 1))                                        # (BD, Z)

    # Block-diagonal adjacency so the whole batch is one matmul.
    A_bd = jnp.kron(jnp.eye(B, dtype=jnp.float32), adj_inv)              # (BD, BD)

    # --- pack constants into one lane-dense (R, 128) slab, 8-row aligned ---
    consts = [A_bd, C_tiled, W1, b1.reshape(1, H), W2, b2.reshape(1, O)]
    offs = []
    row = 0
    for a in consts:
        offs.append(row)
        row += _pad8(a.shape[0])
    R = _pad8(row)
    slab = jnp.zeros((R, LANES), dtype=jnp.float32)
    for off, a in zip(offs, consts):
        slab = slab.at[off:off + a.shape[0], 0:a.shape[1]].set(
            a.astype(jnp.float32))

    # Fold batch into rows; reshape back after the kernel (free layout plumbing).
    z2 = input_z.reshape(BD, Z).astype(jnp.float32)

    # Free scheduling hint for XLA around the custom call.
    flops = 2 * BD * BD * Z + 2 * BD * Z * H + 2 * BD * H * O
    bytes_accessed = 4 * (R * LANES + BD * Z + BD * (Z + O))
    cost = pl.CostEstimate(flops=flops, transcendentals=0,
                           bytes_accessed=bytes_accessed)

    kernel = functools.partial(
        _decoder_kernel, dims=(BD, Z, H, O), offs=tuple(offs))

    out_slab = pl.pallas_call(
        kernel,
        out_shape=jax.ShapeDtypeStruct((BD, Z + O), jnp.float32),
        grid_spec=pltpu.PrefetchScalarGridSpec(
            num_scalar_prefetch=0,
            grid=(1,),
            in_specs=[
                pl.BlockSpec((R, LANES), lambda i: (0, 0)),    # packed constants
                pl.BlockSpec((BD, Z), lambda i: (0, 0)),       # z (batch folded)
            ],
            out_specs=pl.BlockSpec((BD, Z + O), lambda i: (0, 0)),
        ),
        compiler_params=pltpu.CompilerParams(
            dimension_semantics=("arbitrary",)),
        cost_estimate=cost,
    )(slab, z2)

    mat_z = out_slab[:, :Z].reshape(B, d, Z)
    out = out_slab[:, Z:Z + O].reshape(B, d, O)
    return mat_z, out, adj_A_tilt


def _reference_forward(input_z, origin_A, adj_A_tilt, Wa, W1, b1, W2, b2):
    d = origin_A.shape[0]
    adj_inv = jnp.linalg.inv(jnp.eye(d, dtype=jnp.float32) - origin_A.T)
    mat_z = jnp.einsum('ij,bjk->bik', adj_inv, input_z + Wa) - Wa
    h3 = jax.nn.relu(mat_z @ W1 + b1)
    out = h3 @ W2 + b2
    return mat_z, out, adj_A_tilt


def _xavier_normal(key, fan_in, fan_out):
    std = (2.0 / (fan_in + fan_out)) ** 0.5
    # stored as (in, out) for the kernel (torch Linear.weight is (out, in))
    return std * jax.random.normal(key, (fan_in, fan_out), dtype=jnp.float32)


if __name__ == "__main__":
    # Small shapes consistent with the module:
    B = 2           # batch_size
    d = 8           # data_variable_size (number of nodes)
    Z = 16          # n_in_z
    H = 32          # n_hid
    O = 16          # n_out

    key = jax.random.PRNGKey(0)
    k_z, k_A, k_At, k_Wa, k_w1, k_w2 = jax.random.split(key, 6)

    input_z = jax.random.normal(k_z, (B, d, Z), dtype=jnp.float32)
    origin_A = 0.1 * jax.random.normal(k_A, (d, d), dtype=jnp.float32)
    adj_A_tilt = jax.random.normal(k_At, (d, d), dtype=jnp.float32)
    Wa = 0.1 * jax.random.normal(k_Wa, (Z,), dtype=jnp.float32)

    # Linear params: xavier_normal weights, zero biases (as in init_weights()).
    W1 = _xavier_normal(k_w1, Z, H)
    b1 = jnp.zeros((H,), dtype=jnp.float32)
    W2 = _xavier_normal(k_w2, H, O)
    b2 = jnp.zeros((O,), dtype=jnp.float32)

    mat_z, out, adj_tilt = mlp_decoder_forward(
        input_z, origin_A, adj_A_tilt, Wa, W1, b1, W2, b2)
    jax.block_until_ready((mat_z, out, adj_tilt))

    # Correctness check against plain-JAX reference (original formulation,
    # so the block-diag + precomputed-C refactors are validated too).
    mat_z_ref, out_ref, _ = _reference_forward(
        input_z, origin_A, adj_A_tilt, Wa, W1, b1, W2, b2)
    assert jnp.allclose(mat_z, mat_z_ref, atol=1e-5, rtol=1e-5)
    assert jnp.allclose(out, out_ref, atol=1e-5, rtol=1e-5)

    print("KERNEL_OK")
</pallas_src>

<mosaic_0001>
module attributes {stable_mosaic.version = 11 : i64} {
  func.func @_decoder_kernel(%arg0: i32, %arg1: memref<96x128xf32, #tpu.memory_space<vmem>>, %arg2: memref<16x16xf32, #tpu.memory_space<vmem>>, %arg3: memref<16x32xf32, #tpu.memory_space<vmem>>) attributes {dimension_semantics = [#tpu.dimension_semantics<arbitrary>], iteration_bounds = array<i64: 1>, scalar_prefetch = 0 : i64, scratch_operands = 0 : i64, tpu.core_type = #tpu.core_type<tc>, window_params = [{pipeline_mode = #tpu.pipeline_mode<synchronous>, transform_indices = @transform_0, window_bounds = array<i64: 96, 128>}, {pipeline_mode = #tpu.pipeline_mode<synchronous>, transform_indices = @transform_1, window_bounds = array<i64: 16, 16>}, {pipeline_mode = #tpu.pipeline_mode<synchronous>, transform_indices = @transform_2, window_bounds = array<i64: 16, 32>}]} {
    %c0 = arith.constant 0 : index
    %c0_0 = arith.constant 0 : index
    %0 = vector.load %arg1[%c0, %c0_0] : memref<96x128xf32, #tpu.memory_space<vmem>>, vector<16x16xf32>
    %c16 = arith.constant 16 : index
    %c0_1 = arith.constant 0 : index
    %1 = vector.load %arg1[%c16, %c0_1] : memref<96x128xf32, #tpu.memory_space<vmem>>, vector<16x16xf32>
    %c32 = arith.constant 32 : index
    %c0_2 = arith.constant 0 : index
    %2 = vector.load %arg1[%c32, %c0_2] : memref<96x128xf32, #tpu.memory_space<vmem>>, vector<16x32xf32>
    %c48 = arith.constant 48 : index
    %c0_3 = arith.constant 0 : index
    %3 = vector.load %arg1[%c48, %c0_3] : memref<96x128xf32, #tpu.memory_space<vmem>>, vector<1x32xf32>
    %c56 = arith.constant 56 : index
    %c0_4 = arith.constant 0 : index
    %4 = vector.load %arg1[%c56, %c0_4] : memref<96x128xf32, #tpu.memory_space<vmem>>, vector<32x16xf32>
    %c88 = arith.constant 88 : index
    %c0_5 = arith.constant 0 : index
    %5 = vector.load %arg1[%c88, %c0_5] : memref<96x128xf32, #tpu.memory_space<vmem>>, vector<1x16xf32>
    %c0_6 = arith.constant 0 : index
    %c0_7 = arith.constant 0 : index
    %6 = vector.load %arg2[%c0_6, %c0_7] : memref<16x16xf32, #tpu.memory_space<vmem>>, vector<16x16xf32>
    %cst = arith.constant dense<0.000000e+00> : vector<16x16xf32>
    %7 = tpu.matmul %0, %6, %cst {dimension_numbers = #tpu.dot_dimension_numbers<[1], [0], [0], [1], [0, 0, 1, 1], [], []>} : vector<16x16xf32>, vector<16x16xf32>, vector<16x16xf32> -> vector<16x16xf32>
    %8 = arith.addf %7, %1 : vector<16x16xf32>
    %cst_8 = arith.constant dense<0.000000e+00> : vector<16x32xf32>
    %9 = tpu.matmul %8, %2, %cst_8 {dimension_numbers = #tpu.dot_dimension_numbers<[1], [0], [0], [1], [0, 0, 1, 1], [], []>} : vector<16x16xf32>, vector<16x32xf32>, vector<16x32xf32> -> vector<16x32xf32>
    %10 = vector.broadcast %3 : vector<1x32xf32> to vector<16x32xf32>
    %11 = arith.addf %9, %10 : vector<16x32xf32>
    %cst_9 = arith.constant 0.000000e+00 : f32
    %12 = vector.broadcast %cst_9 : f32 to vector<16x32xf32>
    %13 = arith.maximumf %11, %12 : vector<16x32xf32>
    %cst_10 = arith.constant dense<0.000000e+00> : vector<16x16xf32>
    %14 = tpu.matmul %13, %4, %cst_10 {dimension_numbers = #tpu.dot_dimension_numbers<[1], [0], [0], [1], [0, 0, 1, 1], [], []>} : vector<16x32xf32>, vector<32x16xf32>, vector<16x16xf32> -> vector<16x16xf32>
    %15 = vector.broadcast %5 : vector<1x16xf32> to vector<16x16xf32>
    %16 = arith.addf %14, %15 : vector<16x16xf32>
    %c0_11 = arith.constant 0 : index
    %c0_12 = arith.constant 0 : index
    %17 = vector.load %arg3[%c0_11, %c0_12] : memref<16x32xf32, #tpu.memory_space<vmem>>, vector<16x16xf32>
    tpu.vector_store %arg3[%c0_11, %c0_12], %8 {strides = array<i32>} : memref<16x32xf32, #tpu.memory_space<vmem>>, vector<16x16xf32>,
    %c0_13 = arith.constant 0 : index
    %c16_14 = arith.constant 16 : index
    %18 = vector.load %arg3[%c0_13, %c16_14] : memref<16x32xf32, #tpu.memory_space<vmem>>, vector<16x16xf32>
    tpu.vector_store %arg3[%c0_13, %c16_14], %16 {strides = array<i32>} : memref<16x32xf32, #tpu.memory_space<vmem>>, vector<16x16xf32>,
    return
  }
  func.func @transform_0(%arg0: i32) -> (i32, i32) {
    %c0_i32 = arith.constant 0 : i32
    %c0_i32_0 = arith.constant 0 : i32
    %c0_i32_1 = arith.constant 0 : i32
    return %c0_i32, %c0_i32_0 : i32, i32
  }
  func.func @transform_1(%arg0: i32) -> (i32, i32) {
    %c0_i32 = arith.constant 0 : i32
    %c0_i32_0 = arith.constant 0 : i32
    %c0_i32_1 = arith.constant 0 : i32
    return %c0_i32, %c0_i32_0 : i32, i32
  }
  func.func @transform_2(%arg0: i32) -> (i32, i32) {
    %c0_i32 = arith.constant 0 : i32
    %c0_i32_0 = arith.constant 0 : i32
    %c0_i32_1 = arith.constant 0 : i32
    return %c0_i32, %c0_i32_0 : i32, i32
  }
}

</mosaic_0001>

<bundles_post_ra>
// kernel: tpu_custom_call.1
= control target key start
LH: loop header
LB: loop body
LE: loop exit
PB: predicated region body
PF: predicated region fallthrough
CT: control target
= control target key end

     0   :  { %7 = vsyncpa [#allocation3], 0  ;;  %s504_s0 = inlined_call_operand.hbm [shape: f32[96,128], index: 0, kind: input, shape index: {}]   ;;  %s505_s1 = inlined_call_operand.hbm [shape: f32[16,16], index: 1, kind: input, shape index: {}]   ;;  %s506_s2 = inlined_call_operand.hbm [shape: f32[16,32], index: 2, kind: output, shape index: {}]  }
   0x1   :  { %8 = vsyncpa [#allocation6], 0 }
   0x2   :  { %9 = vsyncpa [#allocation4], 0  ;;  %s459_s9 = smov [#allocation2]  }
   0x3   :  { %s15_s10 = sshll.u32 %s459_s9, 4  ;;  %s16_s10 = int_to_ptr.vmem [resolvable:$true] %s15_s10 }
   0x4   :  { %s401_s11 = scalar_lea.vmem %s16_s10, 1536  ;;  %p406_p1 = scmp.lt.s32.totalorder %s16_s10, %s16_s10 }
   0x5   :  { %p402_p0 = scmp.ne.s32.totalorder %s16_s10, %s401_s11  ;;  %p407_p2 = scmp.lt.s32.totalorder %s401_s11, %s401_s11 }
   0x7   :  { %p408_p3 = por %p407_p2, %p406_p1 }
   0x9   :  { %p409_p4 = pnand %p408_p3, %p402_p0 }
   0xb   :  { %412 = shalt.err (!%p409_p4)
}
   0xc   :  { %s460_s12 = smov 128   ;;  %s461_s13 = smov 8  }
   0xd   :  { %21 = dma.hbm_to_vmem [thread:$0]  %s504_s0, 1536, %s16_s10, [#allocation3], %s460_s12, %s460_s12, %s461_s13  }
   0xe   :  { %s462_s16 = smov [#allocation5]  }
   0xf   :  { %s27_s17 = sshll.u32 %s462_s16, 4  ;;  %s28_s17 = int_to_ptr.vmem [resolvable:$true] %s27_s17 }
  0x10   :  { %s421_s18 = scalar_lea.vmem %s28_s17, 256  ;;  %p426_p6 = scmp.lt.s32.totalorder %s28_s17, %s28_s17 }
  0x11   :  { %p422_p5 = scmp.ne.s32.totalorder %s28_s17, %s421_s18  ;;  %p427_p7 = scmp.lt.s32.totalorder %s421_s18, %s421_s18 }
  0x13   :  { %p428_p8 = por %p427_p7, %p426_p6 }
  0x15   :  { %p429_p9 = pnand %p428_p8, %p422_p5 }
  0x17   :  { %432 = shalt.err (!%p429_p9)
}
  0x18   :  { %33 = dma.hbm_to_vmem [thread:$0]  %s505_s1, 256, %s28_s17, [#allocation6], %s460_s12, %s460_s12, %s461_s13  }
  0x19   :  { %453 = dma.done.wait [#allocation3], 1536  }
  0x1a   :  { %454 = vsyncadd [#allocation3], 4294965760 }
  0x1b   :  { %455 = dma.done.wait [#allocation6], 256  }
  0x1c   :  { %456 = vsyncadd [#allocation6], 4294967040  ;;  %vm54_vm0 = vcmask 130048   ;;  %v53_v0 = vld [vmem:[#allocation5 + $0x8] sm:$0xff]  ;;  %v52_v1 = vld [vmem:[#allocation5] sm:$0xff]  ;;  %vm227_vm1 = vcmask 261120  }
  0x1d   :  { %v40_v2 = vld [vmem:[#allocation2] sm:$0xff]  ;;  %362 = vmatprep.subr.mxu1 %v53_v0  ;;  %v41_v3 = vld [vmem:[#allocation2 + $0x8] sm:$0xff]  ;;  %v43_v6 = vld [vmem:[#allocation2 + $0x18] sm:$0xff]  ;;  %s463_s0 = smov 16   ;;  %vm319_vm2 = vcmask 261248   ;;  %s464_s1 = smov [#allocation7]  }
  0x1e   :  { %366 = vmatprep.mubr.msk.f32.mxu1 %vm54_vm0, %v40_v2  ;;  %363 = vmatpush3.msra.mxu1 %v53_v0  ;;  %v45_v4 = vld [vmem:[#allocation2 + $0x28] sm:$0xff]  ;;  %v44_v5 = vld [vmem:[#allocation2 + $0x20] sm:$0xff]  ;;  %v42_v8 = vld [vmem:[#allocation2 + $0x10] sm:$0xff]  ;;  %s327_s21 = sshll.u32 %s464_s1, 4  ;;  %s328_s21 = int_to_ptr.vmem [resolvable:$true] %s327_s21 }
  0x1f   :  { %364 = vmatprep.subr.mxu1 %v52_v1  ;;  %v50_v12 = vld [vmem:[#allocation2 + $0x50] sm:$0xff]  ;;  %v49_v13 = vld [vmem:[#allocation2 + $0x48] sm:$0xff]  ;;  %v48_v14 = vld [vmem:[#allocation2 + $0x40] sm:$0xff]  ;;  %s433_s22 = scalar_lea.vmem %s328_s21, 256  ;;  %p438_p11 = scmp.lt.s32.totalorder %s328_s21, %s328_s21 }
  0x20   :  { %365 = vmatpush3.msra.mxu1 %v52_v1  ;;  %376 = vmatprep.subr.mxu0 %v50_v12  ;;  %v47_v15 = vld [vmem:[#allocation2 + $0x38] sm:$0xff]  ;;  %v342_v16 = vld [vmem:[#allocation2 + $0x30] ss:$0 sm:$0xff]  ;;  %p434_p10 = scmp.ne.s32.totalorder %s328_s21, %s433_s22  ;;  %p439_p12 = scmp.lt.s32.totalorder %s433_s22, %s433_s22 }
  0x21   :  { %367 = vmatmul.mubr.msk.f32.vlgmr.msra.gmra.mxu1 %vm54_vm0, %v41_v3  ;;  %369 = vmatprep.subr.mxu1 %v45_v4  ;;  %v345_v24 = vld [vmem:[#allocation2 + $0x58] ss:$0 sm:$0xff] }
  0x22   :  { %370 = vmatpush3.msra.mxu1 %v45_v4  ;;  %377 = vmatpush3.msra.mxu0 %v50_v12  ;;  %p440_p13 = por %p439_p12, %p438_p11 }
  0x23   :  { %371 = vmatprep.subr.mxu1 %v44_v5  ;;  %378 = vmatprep.subr.mxu0 %v49_v13 }
  0x24   :  { %372 = vmatpush3.msra.mxu1 %v44_v5  ;;  %379 = vmatpush3.msra.mxu0 %v49_v13  ;;  %p441_p0 = pnand %p440_p13, %p434_p10 }
  0x25   :  { %380 = vmatprep.subr.mxu0 %v48_v14 }
  0x26   :  { %381 = vmatpush3.msra.mxu0 %v48_v14 }
  0x27   :  { %382 = vmatprep.subr.mxu0 %v47_v15 }
  0x28   :  { %383 = vmatpush3.msra.mxu0 %v47_v15 }
  0xe1   :  { %v368_v7 = vpop.f32.mrf.mxu1 }
  0xe2   :  { %v133_v9 = vadd.f32 %v368_v7, %v43_v6 }
  0xe3   :  { %v127_v10 = vpop.f32.mrf.mxu1 }
  0xe4   :  { %310 = vst.msk [vmem:[#allocation7 + $0x8] sm:$0xff] %vm54_vm0, %v133_v9  ;;  %v128_v11 = vadd.f32 %v127_v10, %v42_v8 }
  0xe6   :  { %309 = vst.msk [vmem:[#allocation7] sm:$0xff] %vm54_vm0, %v128_v11  ;;  %373 = vmatprep.mubr.msk.f32.mxu1 %vm54_vm0, %v128_v11 }
  0xe7   :  { %374 = vmatmul.mubr.msk.f32.vlgmr.msra.gmra.mxu1 %vm54_vm0, %v133_v9 }
 0x1a7   :  { %v375_v17 = vpop.f32.mrf.mxu1 }
 0x1a8   :  { %v218_v18 = vadd.f32 %v375_v17, %v342_v16 }
 0x1a9   :  { %v212_v19 = vpop.f32.mrf.mxu1 }
 0x1aa   :  { %v213_v20 = vadd.f32 %v342_v16, %v212_v19  ;;  %v222_v22 = vmax.f32 %v218_v18, 0.0 }
 0x1ac   :  { %v221_v21 = vmax.f32 %v213_v20, 0.0 }
 0x1ae   :  { %384 = vmatprep.mubr.msk.f32.mxu0 %vm227_vm1, %v221_v21 }
 0x1af   :  { %385 = vmatmul.mubr.msk.f32.vlgmr.msra.gmra.mxu0 %vm227_vm1, %v222_v22 }
 0x26f   :  { %v386_v23 = vpop.f32.mrf.mxu0 }
 0x270   :  { %v306_v27 = vadd.f32 %v386_v23, %v345_v24 }
 0x271   :  { %v300_v25 = vpop.f32.mrf.mxu0 }
 0x272   :  { %v301_v26 = vadd.f32 %v345_v24, %v300_v25 }
 0x274   :  { %313 = vrot.lane.b32.xlu0 %v301_v26, %s463_s0 }
 0x278   :  { %315 = vrot.lane.b32.xlu0 %v306_v27, %s463_s0 }
 0x2e6   :  { %v314_v28 = vpop.permute.xlu0 %313 }
 0x2e7   :  { %320 = vst.msk [vmem:[#allocation7] sm:$0xff] %vm319_vm2, %v314_v28 }
 0x2ea   :  { %v316_v29 = vpop.permute.xlu0 %315 }
 0x2eb   :  { %321 = vst.msk [vmem:[#allocation7 + $0x8] sm:$0xff] %vm319_vm2, %v316_v29 }
 0x2ec   :  { %444 = shalt.err (!%p441_p0)
}
 0x2ed   :  { %333 = dma.vmem_to_hbm [thread:$0]  %s328_s21, 256, %s506_s2, [#allocation4], %s460_s12, %s460_s12, %s461_s13  }
 0x2ee   :  { %457 = dma.done.wait [#allocation4], 256  }
 0x2ef   :  { %458 = vsyncadd [#allocation4], 4294967040 }
 0x2f0   :  { %337 = vsyncpa [#allocation3], 1 }
 0x2f1   :  { %338 = vsyncpa [#allocation6], 1 }
 0x2f2   :  { %339 = vsyncpa [#allocation4], 1 }

</bundles_post_ra>
